<compile_context>
chip_gen: v7x
topology: tpu7x:2x2x1
jax: 0.10.0
libtpu: 0.0.40
codegen_flags: <defaults>
</compile_context>

<pallas_src>
import jax
import jax.numpy as jnp
from jax.experimental import pallas as pl
from jax.experimental.pallas import tpu as pltpu

# ----------------------------- problem sizes ---------------------------------
N_LAGS = 9        # odd, as asserted in the torch module
N_HIDDEN = 32     # n_hidden_units
N_LAYERS = 2      # n_hidden_layers
SEQ_LEN = 256     # length of the 1-D input signal x
MAX_TILE_N = 1024  # sequence-tile width: overhead amortized by ~512-1024 lanes


# ------------------------------- kernel --------------------------------------
def _make_kernel(n_rest_layers):
    """Build the kernel body for a given number of post-fold hidden layers."""
    hi = jax.lax.Precision.HIGHEST

    if n_rest_layers > 0:
        def kernel(bj_ref,            # SMEM (1,)   join bias
                   xsh_ref,           # VMEM (K+1, TN)  lag window + ones row
                   w1f_ref,           # VMEM (H, K+1)   fused stage-1 weight (+bias col)
                   wh_ref, bh_ref,    # VMEM (L-1, H, H), (L-1, H, 1)
                   wj_ref,            # VMEM (1, H)
                   o_ref):            # VMEM (1, TN)
            # Fused FIR + linear_explode + hidden layer 0 (+ its bias via the
            # ones row of xsh): a single MXU matmul followed by the ReLU.
            z = jnp.maximum(
                jnp.dot(w1f_ref[...], xsh_ref[...],
                        preferred_element_type=jnp.float32, precision=hi),
                0.0)                                                   # (H, TN)
            # Remaining hidden layers: Linear(H, H) + ReLU.  Activations are
            # (H, TN): hidden units on sublanes, sequence on lanes.
            for l in range(wh_ref.shape[0]):
                z = jnp.maximum(
                    jnp.dot(wh_ref[l], z,
                            preferred_element_type=jnp.float32,
                            precision=hi) + bh_ref[l],
                    0.0)
            # linear_join: (1, H) @ (H, TN) + bias -> (1, TN), lane-dense.
            o_ref[...] = jnp.dot(wj_ref[...], z,
                                 preferred_element_type=jnp.float32,
                                 precision=hi) + bj_ref[0]
    else:
        def kernel(bj_ref, xsh_ref, w1f_ref, wj_ref, o_ref):
            z = jnp.maximum(
                jnp.dot(w1f_ref[...], xsh_ref[...],
                        preferred_element_type=jnp.float32, precision=hi),
                0.0)
            o_ref[...] = jnp.dot(wj_ref[...], z,
                                 preferred_element_type=jnp.float32,
                                 precision=hi) + bj_ref[0]
    return kernel


# ------------------------------- wrapper --------------------------------------
def _choose_tile(n_al):
    """Sequence tile width (n_al is a multiple of 128).

    Single grid step whenever the whole (lane-aligned) sequence fits one tile:
    the grid is a serial loop on v5e/v6e, so splitting small problems only adds
    per-step overhead.  For large N the tiling caps at MAX_TILE_N, which also
    gives v7x's two TensorCores multiple 'parallel' steps once per-core work is
    large enough to matter."""
    if n_al <= MAX_TILE_N:
        return n_al
    tile = MAX_TILE_N
    while n_al % tile != 0:
        tile -= 128
    return tile


def wiener_forward(x, fir, we, be, wh, bh, wj, bj):
    """x: (N,) float32.  Returns y: (N,) float32."""
    N = x.shape[0]
    K = fir.shape[0]
    pad = K // 2
    H = we.shape[0]
    L = wh.shape[0]

    # Align the sequence to a lane multiple; the extra outputs are discarded.
    n_al = ((N + 127) // 128) * 128
    x_al = jnp.pad(x, (0, n_al - N)) if n_al != N else x

    tile_n = _choose_tile(n_al)
    nt = n_al // tile_n

    # Lag-shifted window with K *static* shifts (no gather): xsh[k, n] = xpad[n+k].
    # Lag index -> sublane axis, sequence -> lane axis, every row lane-aligned.
    # A trailing ones row carries the fused first-stage bias through the same
    # MXU contraction (K+1 = 10 sublanes, still inside one (8,128)-padded tile).
    # TODO(synk): for very large N, build these rows in-kernel from a halo'd
    # xpad block (pltpu.roll / static shifts) instead of staging (K+1, N) in HBM.
    zeros = jnp.zeros((pad,), x.dtype)
    xpad = jnp.concatenate([zeros, x_al, zeros])                 # (n_al + K - 1,)
    rows = [xpad[k:k + n_al] for k in range(K)]
    rows.append(jnp.ones((n_al,), x.dtype))
    xsh = jnp.stack(rows, axis=0)                                # (K + 1, n_al)

    # Exact algebraic fold of linear_explode + hidden layer 0 (no activation
    # sits between them in the torch module):
    #   relu(W1 @ (we*z1 + be) + b1) = relu((W1@we)*z1 + (W1@be + b1))
    hi = jax.lax.Precision.HIGHEST
    w1we = jnp.matmul(wh[0], we, precision=hi)                          # (H, 1)
    b1f = jnp.matmul(wh[0], be[:, None], precision=hi)[:, 0] + bh[0]    # (H,)
    wef = w1we * fir[None, :]                                           # (H, K)
    w1f = jnp.concatenate([wef, b1f[:, None]], axis=1)                  # (H, K+1)

    n_rest = L - 1
    kernel = _make_kernel(n_rest)

    # Weights/biases keep constant index maps so they stay VMEM-resident across
    # grid steps (Pallas skips the re-DMA for unchanged blocks).
    in_specs = [
        pl.BlockSpec(memory_space=pltpu.MemorySpace.SMEM),       # bj   (1,)
        pl.BlockSpec((K + 1, tile_n), lambda i: (0, i)),         # xsh
        pl.BlockSpec((H, K + 1), lambda i: (0, 0)),              # w1f
    ]
    operands = [bj, xsh, w1f]
    if n_rest > 0:
        wh_rest = wh[1:]                                         # (L-1, H, H)
        bh_rest = bh[1:].reshape(n_rest, H, 1)                   # (L-1, H, 1)
        in_specs += [
            pl.BlockSpec((n_rest, H, H), lambda i: (0, 0, 0)),
            pl.BlockSpec((n_rest, H, 1), lambda i: (0, 0, 0)),
        ]
        operands += [wh_rest, bh_rest]
    in_specs.append(pl.BlockSpec((1, H), lambda i: (0, 0)))      # wj
    operands.append(wj)

    out = pl.pallas_call(
        kernel,
        out_shape=jax.ShapeDtypeStruct((1, n_al), x.dtype),
        grid=(nt,),
        in_specs=in_specs,
        out_specs=pl.BlockSpec((1, tile_n), lambda i: (0, i)),
        compiler_params=pltpu.CompilerParams(
            dimension_semantics=("parallel",)),
    )(*operands)

    return out[0, :N]                                            # (N,)


# ------------------------- deterministic parameters ---------------------------
def init_params(key, n_lags, n_hidden, n_layers, dtype=jnp.float32):
    # FIR filter: delta at the center (same as the torch module __init__),
    # plus a small deterministic perturbation so the conv path is non-trivially
    # exercised.
    k_fir, k_we, k_be, k_wh, k_bh, k_wj, k_bj = jax.random.split(key, 7)
    fir = jnp.zeros((n_lags,), dtype).at[n_lags // 2].set(1.0)
    fir = fir + 0.1 * jax.random.normal(k_fir, (n_lags,), dtype)

    # Mimic torch.nn.Linear default init: U(-1/sqrt(fan_in), 1/sqrt(fan_in)).
    b1 = 1.0                       # fan_in = 1 (linear_explode)
    bH = 1.0 / jnp.sqrt(n_hidden)  # fan_in = H (hidden layers, linear_join)
    we = jax.random.uniform(k_we, (n_hidden, 1), dtype, -b1, b1)          # (H, 1)
    be = jax.random.uniform(k_be, (n_hidden,), dtype, -b1, b1)            # (H,)
    wh = jax.random.uniform(k_wh, (n_layers, n_hidden, n_hidden), dtype, -bH, bH)
    bh = jax.random.uniform(k_bh, (n_layers, n_hidden), dtype, -bH, bH)
    wj = jax.random.uniform(k_wj, (1, n_hidden), dtype, -bH, bH)          # (1, H)
    bj = jax.random.uniform(k_bj, (1,), dtype, -bH, bH)                   # (1,)
    return fir, we, be, wh, bh, wj, bj


# ------------------------------ pure-JAX reference -----------------------------
def ref_forward(x, fir, we, be, wh, bh, wj, bj):
    """Literal (unfolded) translation of the torch forward; validates the fold."""
    K = fir.shape[0]
    N = x.shape[0]
    pad = K // 2
    zeros = jnp.zeros((pad,), x.dtype)
    xpad = jnp.concatenate([zeros, x, zeros])
    # cross-correlation (F.conv1d semantics)
    z1 = jnp.zeros((N,), x.dtype)
    for k in range(K):
        z1 = z1 + xpad[k:k + N] * fir[k]
    hi = jax.lax.Precision.HIGHEST
    z = jnp.matmul(z1[:, None], we.T, precision=hi) + be                 # (N, H)
    for l in range(wh.shape[0]):
        z = jnp.maximum(jnp.matmul(z, wh[l].T, precision=hi) + bh[l], 0.0)
    y = (jnp.matmul(z, wj.T, precision=hi) + bj)[:, 0]                   # (N,)
    return y


# ----------------------------------- main --------------------------------------
if __name__ == "__main__":
    key = jax.random.PRNGKey(0)
    k_x, k_p = jax.random.split(key)
    x = jax.random.normal(k_x, (SEQ_LEN,), jnp.float32)
    fir, we, be, wh, bh, wj, bj = init_params(k_p, N_LAGS, N_HIDDEN, N_LAYERS)

    y = wiener_forward(x, fir, we, be, wh, bh, wj, bj)
    y = jax.block_until_ready(y)

    y_ref = ref_forward(x, fir, we, be, wh, bh, wj, bj)
    # Both sides use Precision.HIGHEST; remaining differences are only the
    # (exact-in-real-arithmetic) layer-1/bias fold reassociation.
    if not jnp.allclose(y, y_ref, rtol=1e-4, atol=1e-4):
        raise AssertionError(
            f"mismatch: max abs err = {float(jnp.max(jnp.abs(y - y_ref)))}")

    print("KERNEL_OK")
</pallas_src>

<mosaic_0001>
module attributes {stable_mosaic.version = 11 : i64} {
  func.func @kernel(%arg0: i32, %arg1: memref<1xf32, #tpu.memory_space<smem>>, %arg2: memref<10x256xf32, #tpu.memory_space<vmem>>, %arg3: memref<32x10xf32, #tpu.memory_space<vmem>>, %arg4: memref<1x32x32xf32, #tpu.memory_space<vmem>>, %arg5: memref<1x32x1xf32, #tpu.memory_space<vmem>>, %arg6: memref<1x32xf32, #tpu.memory_space<vmem>>, %arg7: memref<1x256xf32, #tpu.memory_space<vmem>>) attributes {dimension_semantics = [#tpu.dimension_semantics<parallel>], iteration_bounds = array<i64: 1>, scalar_prefetch = 0 : i64, scratch_operands = 0 : i64, tpu.core_type = #tpu.core_type<tc>, window_params = [{transform_indices = @transform_0, window_bounds = array<i64: 1>}, {transform_indices = @transform_1, window_bounds = array<i64: 10, 256>}, {pipeline_mode = #tpu.pipeline_mode<synchronous>, transform_indices = @transform_2, window_bounds = array<i64: 32, 10>}, {pipeline_mode = #tpu.pipeline_mode<synchronous>, transform_indices = @transform_3, window_bounds = array<i64: 1, 32, 32>}, {pipeline_mode = #tpu.pipeline_mode<synchronous>, transform_indices = @transform_4, window_bounds = array<i64: 1, 32, 1>}, {pipeline_mode = #tpu.pipeline_mode<synchronous>, transform_indices = @transform_5, window_bounds = array<i64: 1, 32>}, {transform_indices = @transform_6, window_bounds = array<i64: 1, 256>}]} {
    %c0 = arith.constant 0 : index
    %c0_0 = arith.constant 0 : index
    %0 = vector.load %arg3[%c0, %c0_0] : memref<32x10xf32, #tpu.memory_space<vmem>>, vector<32x10xf32>
    %c0_1 = arith.constant 0 : index
    %c0_2 = arith.constant 0 : index
    %1 = vector.load %arg2[%c0_1, %c0_2] : memref<10x256xf32, #tpu.memory_space<vmem>>, vector<10x256xf32>
    %cst = arith.constant dense<0.000000e+00> : vector<32x256xf32>
    %2 = tpu.matmul %0, %1, %cst {dimension_numbers = #tpu.dot_dimension_numbers<[1], [0], [0], [1], [0, 0, 1, 1], [], []>, precision = #tpu.contract_precision<fp32>} : vector<32x10xf32>, vector<10x256xf32>, vector<32x256xf32> -> vector<32x256xf32>
    %cst_3 = arith.constant 0.000000e+00 : f32
    %3 = vector.broadcast %cst_3 : f32 to vector<32x256xf32>
    %4 = arith.maximumf %2, %3 : vector<32x256xf32>
    %c0_4 = arith.constant 0 : index
    %c0_5 = arith.constant 0 : index
    %c0_6 = arith.constant 0 : index
    %5 = vector.load %arg4[%c0_4, %c0_5, %c0_6] : memref<1x32x32xf32, #tpu.memory_space<vmem>>, vector<1x32x32xf32>
    %6 = vector.shape_cast %5 : vector<1x32x32xf32> to vector<32x32xf32>
    %cst_7 = arith.constant dense<0.000000e+00> : vector<32x256xf32>
    %7 = tpu.matmul %6, %4, %cst_7 {dimension_numbers = #tpu.dot_dimension_numbers<[1], [0], [0], [1], [0, 0, 1, 1], [], []>, precision = #tpu.contract_precision<fp32>} : vector<32x32xf32>, vector<32x256xf32>, vector<32x256xf32> -> vector<32x256xf32>
    %c0_8 = arith.constant 0 : index
    %c0_9 = arith.constant 0 : index
    %c0_10 = arith.constant 0 : index
    %8 = vector.load %arg5[%c0_8, %c0_9, %c0_10] : memref<1x32x1xf32, #tpu.memory_space<vmem>>, vector<1x32x1xf32>
    %9 = vector.shape_cast %8 : vector<1x32x1xf32> to vector<32x1xf32>
    %10 = vector.broadcast %9 : vector<32x1xf32> to vector<32x256xf32>
    %11 = arith.addf %7, %10 : vector<32x256xf32>
    %cst_11 = arith.constant 0.000000e+00 : f32
    %12 = vector.broadcast %cst_11 : f32 to vector<32x256xf32>
    %13 = arith.maximumf %11, %12 : vector<32x256xf32>
    %c0_12 = arith.constant 0 : index
    %c0_13 = arith.constant 0 : index
    %14 = vector.load %arg6[%c0_12, %c0_13] : memref<1x32xf32, #tpu.memory_space<vmem>>, vector<1x32xf32>
    %cst_14 = arith.constant dense<0.000000e+00> : vector<1x256xf32>
    %15 = tpu.matmul %14, %13, %cst_14 {dimension_numbers = #tpu.dot_dimension_numbers<[1], [0], [0], [1], [0, 0, 1, 1], [], []>, precision = #tpu.contract_precision<fp32>} : vector<1x32xf32>, vector<32x256xf32>, vector<1x256xf32> -> vector<1x256xf32>
    %c0_15 = arith.constant 0 : index
    %16 = memref.load %arg1[%c0_15] : memref<1xf32, #tpu.memory_space<smem>>
    %17 = vector.broadcast %16 : f32 to vector<1x256xf32>
    %18 = arith.addf %15, %17 : vector<1x256xf32>
    %c0_16 = arith.constant 0 : index
    %c0_17 = arith.constant 0 : index
    %19 = vector.load %arg7[%c0_16, %c0_17] : memref<1x256xf32, #tpu.memory_space<vmem>>, vector<1x256xf32>
    tpu.vector_store %arg7[%c0_16, %c0_17], %18 {strides = array<i32>} : memref<1x256xf32, #tpu.memory_space<vmem>>, vector<1x256xf32>,
    return
  }
  func.func @transform_0(%arg0: i32) -> i32 {
    %c0_i32 = arith.constant 0 : i32
    %c0_i32_0 = arith.constant 0 : i32
    return %c0_i32 : i32
  }
  func.func @transform_1(%arg0: i32) -> (i32, i32) {
    %c0_i32 = arith.constant 0 : i32
    %c0_i32_0 = arith.constant 0 : i32
    return %c0_i32, %arg0 : i32, i32
  }
  func.func @transform_2(%arg0: i32) -> (i32, i32) {
    %c0_i32 = arith.constant 0 : i32
    %c0_i32_0 = arith.constant 0 : i32
    %c0_i32_1 = arith.constant 0 : i32
    return %c0_i32, %c0_i32_0 : i32, i32
  }
  func.func @transform_3(%arg0: i32) -> (i32, i32, i32) {
    %c0_i32 = arith.constant 0 : i32
    %c0_i32_0 = arith.constant 0 : i32
    %c0_i32_1 = arith.constant 0 : i32
    %c0_i32_2 = arith.constant 0 : i32
    return %c0_i32, %c0_i32_0, %c0_i32_1 : i32, i32, i32
  }
  func.func @transform_4(%arg0: i32) -> (i32, i32, i32) {
    %c0_i32 = arith.constant 0 : i32
    %c0_i32_0 = arith.constant 0 : i32
    %c0_i32_1 = arith.constant 0 : i32
    %c0_i32_2 = arith.constant 0 : i32
    return %c0_i32, %c0_i32_0, %c0_i32_1 : i32, i32, i32
  }
  func.func @transform_5(%arg0: i32) -> (i32, i32) {
    %c0_i32 = arith.constant 0 : i32
    %c0_i32_0 = arith.constant 0 : i32
    %c0_i32_1 = arith.constant 0 : i32
    return %c0_i32, %c0_i32_0 : i32, i32
  }
  func.func @transform_6(%arg0: i32) -> (i32, i32) {
    %c0_i32 = arith.constant 0 : i32
    %c0_i32_0 = arith.constant 0 : i32
    return %c0_i32, %arg0 : i32, i32
  }
}

</mosaic_0001>

<bundles_post_ra>
// kernel: tpu_custom_call.1
= control target key start
LH: loop header
LB: loop body
LE: loop exit
PB: predicated region body
PF: predicated region fallthrough
CT: control target
= control target key end

     0   :  { %vm46_vm0 = vcmask 1041408   ;;  %v2274_v7 = vmov 0.0   ;;  %vm33_vm1 = vcmask 80896   ;;  %s2686_s0 = inlined_call_operand.<no memory space> [shape: f32[1], index: 0, kind: input, shape index: {}]   ;;  %s2687_s1 = inlined_call_operand.vmem [shape: f32[10,256], index: 1, kind: input, shape index: {}]   ;;  %s2688_s2 = inlined_call_operand.vmem [shape: f32[32,10], index: 2, kind: input, shape index: {}]   ;;  %s2689_s3 = inlined_call_operand.vmem [shape: f32[1,32,32], index: 3, kind: input, shape index: {}]   ;;  %s2690_s4 = inlined_call_operand.vmem [shape: f32[1,32,1], index: 4, kind: input, shape index: {}]   ;;  %s2691_s5 = inlined_call_operand.vmem [shape: f32[1,32], index: 5, kind: input, shape index: {}]   ;;  %s2692_s6 = inlined_call_operand.hbm [shape: f32[1,256], index: 6, kind: output, shape index: {}]  }
   0x1   :  { %v30_v0 = vld [vmem:[%s2687_s1 + $0x8] sm:$0xff]  ;;  %v32_v1 = vld [vmem:[%s2687_s1 + $0x18] sm:$0x3]  ;;  %v29_v2 = vld [vmem:[%s2687_s1] sm:$0xff]  ;;  %250 = vmatprep.mubr.f32.mxu0 %v2274_v7  ;;  %121 = vmatprep.mubr.f32.mxu1 %v2274_v7 }
   0x2   :  { %v51_v3 = vsel %vm46_vm0, %v32_v1, 0  ;;  %v53_v4 = vand.u32 4294901760, %v30_v0  ;;  %v31_v5 = vld [vmem:[%s2687_s1 + $0x10] sm:$0x3]  ;;  %v55_v6 = vand.u32 4294901760, %v29_v2  ;;  %v25_v8 = vld [vmem:[%s2688_s2] sm:$0xff] }
   0x3   :  { %v57_v9 = vand.u32 4294901760, %v51_v3  ;;  %v48_v10 = vsel %vm46_vm0, %v31_v5, 0  ;;  %v26_v11 = vld [vmem:[%s2688_s2 + $0x8] sm:$0xff]  ;;  %v35_v15 = vsel %vm33_vm1, %v25_v8, 0  ;;  %v27_v16 = vld [vmem:[%s2688_s2 + $0x10] sm:$0xff] }
   0x4   :  { %v2333_v12 = vsub.f32 %v30_v0, %v53_v4  ;;  %v59_v13 = vand.u32 4294901760, %v48_v10  ;;  %v2335_v14 = vsub.f32 %v29_v2, %v55_v6 }
   0x5   :  { %12 = vsyncpa [#allocation4], 0  ;;  %v2341_v17 = vsub.f32 %v51_v3, %v57_v9  ;;  %v38_v18 = vsel %vm33_vm1, %v26_v11, 0  ;;  %v2349_v23 = vand.u32 4294901760, %v35_v15  ;;  %v41_v24 = vsel %vm33_vm1, %v27_v16, 0  ;;  %v28_v31 = vld [vmem:[%s2688_s2 + $0x18] sm:$0xff] }
   0x6   :  { %v168_v19 = vand.u32 4294901760, %v2333_v12  ;;  %v174_v20 = vand.u32 4294901760, %v2335_v14  ;;  %v2346_v21 = vsub.f32 %v48_v10, %v59_v13  ;;  %v2359_v28 = vand.u32 4294901760, %v38_v18  ;;  %v699_v8 = vld [vmem:[%s2689_s3] sm:$0xff]  ;;  %v705_v10 = vld [vmem:[%s2690_s4 + $0x10] sm:$0xff]  ;;  %s2277_s28 = smov [#allocation3]  }
   0x7   :  { %v180_v22 = vand.u32 4294901760, %v2341_v17  ;;  %v2363_v30 = vsub.f32 %v35_v15, %v2349_v23  ;;  %v2368_v32 = vpack.c.bf16 %v57_v9, %v53_v4  ;;  %v2376_v38 = vand.u32 4294901760, %v41_v24  ;;  %v703_v9 = vld [vmem:[%s2690_s4] sm:$0xff]  ;;  %v700_v15 = vld [vmem:[%s2689_s3 + $0x8] sm:$0xff]  ;;  %s2016_s29 = sshll.u32 %s2277_s28, 4  ;;  %s2017_s29 = int_to_ptr.vmem [resolvable:$true] %s2016_s29 }
   0x8   :  { %v169_v25 = vsub.f32 %v2333_v12, %v168_v19  ;;  %v175_v26 = vsub.f32 %v2335_v14, %v174_v20  ;;  %v186_v27 = vand.u32 4294901760, %v2346_v21  ;;  %v2374_v36 = vsub.f32 %v38_v18, %v2359_v28  ;;  %v701_v18 = vld [vmem:[%s2689_s3 + $0x10] sm:$0xff]  ;;  %p2255_p1 = scmp.lt.s32.totalorder %s2017_s29, %s2017_s29 }
   0x9   :  { %v181_v29 = vsub.f32 %v2341_v17, %v180_v22  ;;  %v2378_v39 = vpack.c.bf16 %v59_v13, %v55_v6  ;;  %v124_v40 = vand.u32 4294901760, %v2363_v30  ;;  %2025 = vmatprep.subr.bf16.mxu1 %v2368_v32  ;;  %v44_v42 = vsel %vm33_vm1, %v28_v31, 0  ;;  %v704_v13 = vld [vmem:[%s2690_s4 + $0x8] sm:$0xff]  ;;  %v702_v31 = vld [vmem:[%s2689_s3 + $0x18] sm:$0xff] }
   0xa   :  { %v170_v33 = vand.u32 4294901760, %v169_v25  ;;  %v176_v34 = vand.u32 4294901760, %v175_v26  ;;  %v187_v35 = vsub.f32 %v2346_v21, %v186_v27  ;;  %v135_v43 = vand.u32 4294901760, %v2374_v36 }
   0xb   :  { %v182_v37 = vand.u32 4294901760, %v181_v29  ;;  %v2032_v45 = vpack.c.bf16 %v2341_v17, %v2333_v12  ;;  %v145_v46 = vsub.f32 %v41_v24, %v2376_v38  ;;  %2027 = vmatpush1.bf16.msra.mxu1 %v2378_v39  ;;  %v125_v47 = vsub.f32 %v2363_v30, %v124_v40 }
   0xc   :  { %v188_v41 = vand.u32 4294901760, %v187_v35  ;;  %v136_v49 = vsub.f32 %v2374_v36, %v135_v43  ;;  %v2390_v50 = vand.u32 4294901760, %v44_v42  ;;  %v2034_v53 = vpack.c.bf16 %v2346_v21, %v2335_v14  ;;  %v706_v14 = vld [vmem:[%s2690_s4 + $0x18] sm:$0xff] }
   0xd   :  { %v2028_v44 = vpack.c.bf16 %v182_v37, %v170_v33  ;;  %v146_v51 = vand.u32 4294901760, %v145_v46  ;;  %v126_v52 = vand.u32 4294901760, %v125_v47  ;;  %v2040_v61 = vpack.c.bf16 %v180_v22, %v168_v19 }
   0xe   :  { %v2030_v48 = vpack.c.bf16 %v188_v41, %v176_v34  ;;  %v156_v54 = vsub.f32 %v44_v42, %v2390_v50  ;;  %v137_v55 = vand.u32 4294901760, %v136_v49  ;;  %v2042_v62 = vpack.c.bf16 %v186_v27, %v174_v20 }
   0xf   :  { %2029 = vmatprep.subr.bf16.mxu0 %v2028_v44  ;;  %127 = vmatmul.mubr.f32.vlgmr.msra.gmra.mrb[0].mxu1 %v126_v52  ;;  %v147_v56 = vsub.f32 %v145_v46, %v146_v51  ;;  %vm727_vm2 = vcmask 261120   ;;  %v2275_v11 = vmov 0  }
  0x10   :  { %2031 = vmatpush1.bf16.msra.mxu0 %v2030_v48  ;;  %132 = vmatprep.mubr.f32.mxu1 %v2274_v7  ;;  %v157_v57 = vand.u32 4294901760, %v156_v54  ;;  %v729_v12 = vsel %vm727_vm2, %v699_v8, 0  ;;  %v732_v17 = vsel %vm727_vm2, %v700_v15, 0  ;;  %v735_v25 = vsel %vm727_vm2, %v701_v18, 0 }
  0x11   :  { %2033 = vmatprep.subr.bf16.mxu0 %v2032_v45  ;;  %v148_v58 = vand.u32 4294901760, %v147_v56  ;;  %2248 = vset.pattern.permute.xlu0 %v2275_v11  ;;  %v2466_v16 = vand.u32 4294901760, %v729_v12  ;;  %v2475_v21 = vand.u32 4294901760, %v732_v17  ;;  %v2485_v35 = vand.u32 4294901760, %v735_v25 }
  0x12   :  { %v158_v59 = vsub.f32 %v156_v54, %v157_v57  ;;  %2249 = vset.pattern.permute.xlu1 %v2275_v11  ;;  %709 = vperm.xlu0 %2248, %v703_v9  }
  0x13   :  { %252 = vmatmul.mubr.f32.vlgmr.msra.gmra.mrb[0].mxu0 %v2349_v23  ;;  %138 = vmatmul.mubr.f32.gmra.mrb[2].mxu1 %v137_v55  ;;  %v2473_v20 = vsub.f32 %v729_v12, %v2466_v16 }
  0x14   :  { %257 = vmatprep.mubr.f32.mxu0 %v2274_v7  ;;  %2035 = vmatpush1.bf16.msra.mxu0 %v2034_v53  ;;  %v159_v60 = vand.u32 4294901760, %v158_v59 }
  0x15   :  { %2037 = vmatprep.subr.bf16.mxu0 %v2368_v32  ;;  %143 = vmatprep.mubr.f32.mxu1 %v2274_v7  ;;  %v815_v29 = vand.u32 4294901760, %v2473_v20 }
  0x16   :  { %719 = vperm.xlu1 %2249, %v705_v10   ;;  %714 = vperm.xlu0 %2248, %v704_v13  }
  0x17   :  { %259 = vmatmul.mubr.f32.gmra.mrb[2].mxu0 %v2359_v28  ;;  %149 = vmatmul.mubr.f32.gmra.mrb[4].mxu1 %v148_v58  ;;  %v2497_v44 = vsub.f32 %v2473_v20, %v815_v29 }
  0x18   :  { %264 = vmatprep.mubr.f32.mxu0 %v2274_v7  ;;  %154 = vmatprep.mubr.f32.mxu1 %v2274_v7 }
  0x1a   :  { %724 = vperm.xlu1 %2249, %v706_v14  }
  0x1b   :  { %266 = vmatmul.mubr.f32.gmra.mrb[4].mxu0 %v2376_v38  ;;  %160 = vmatmul.mubr.f32.gmra.mrb[6].mxu1 %v159_v60 }
  0x1c   :  { %271 = vmatprep.mubr.f32.mxu0 %v2274_v7  ;;  %812 = vmatprep.mubr.f32.mxu1 %v2274_v7 }
  0x1f   :  { %273 = vmatmul.mubr.f32.gmra.mrb[6].mxu0 %v2390_v50 }
  0x20   :  { %351 = vmatprep.mubr.f32.mxu0 %v2274_v7 }
  0x23   :  { %354 = vmatmul.mubr.f32.vlgmr.msra.gmra.mrb[0].mxu0 %v2363_v30  ;;  %v2480_v30 = vsub.f32 %v732_v17, %v2475_v21 }
  0x24   :  { %359 = vmatprep.mubr.f32.mxu0 %v2274_v7  ;;  %2039 = vmatpush1.bf16.msra.mxu0 %v2378_v39 }
  0x25   :  { %2041 = vmatprep.subr.bf16.mxu0 %v2040_v61  ;;  %v826_v45 = vand.u32 4294901760, %v2480_v30 }
  0x27   :  { %362 = vmatmul.mubr.f32.gmra.mrb[2].mxu0 %v2374_v36 }
  0x28   :  { %367 = vmatprep.mubr.f32.mxu0 %v2274_v7 }
  0x2b   :  { %370 = vmatmul.mubr.f32.gmra.mrb[4].mxu0 %v145_v46 }
  0x2c   :  { %375 = vmatprep.mubr.f32.mxu0 %v2274_v7 }
  0x2f   :  { %378 = vmatmul.mubr.f32.gmra.mrb[6].mxu0 %v156_v54 }
  0x30   :  { %452 = vmatprep.mubr.f32.mxu0 %v2274_v7 }
  0x33   :  { %456 = vmatmul.mubr.f32.vlgmr.msra.gmra.mrb[0].mxu0 %v124_v40  ;;  %v2490_v40 = vsel %vm727_vm2, %v702_v31, 0 }
  0x34   :  { %461 = vmatprep.mubr.f32.mxu0 %v2274_v7  ;;  %2043 = vmatpush1.bf16.msra.mxu0 %v2042_v62  ;;  %v2506_v54 = vand.u32 4294901760, %v2490_v40 }
  0x35   :  { %2045 = vmatprep.subr.bf16.mxu0 %v2368_v32 }
  0x37   :  { %465 = vmatmul.mubr.f32.gmra.mrb[2].mxu0 %v135_v43 }
  0x38   :  { %470 = vmatprep.mubr.f32.mxu0 %v2274_v7 }
  0x3b   :  { %474 = vmatmul.mubr.f32.gmra.mrb[4].mxu0 %v146_v51 }
  0x3c   :  { %479 = vmatprep.mubr.f32.mxu0 %v2274_v7 }
  0x3f   :  { %483 = vmatmul.mubr.f32.gmra.mrb[6].mxu0 %v157_v57 }
  0x40   :  { %565 = vmatprep.mubr.f32.mxu0 %v2274_v7 }
  0x43   :  { %567 = vmatmul.mubr.f32.vlgmr.msra.gmra.mrb[0].mxu0 %v2349_v23 }
  0x44   :  { %572 = vmatprep.mubr.f32.mxu0 %v2274_v7  ;;  %2047 = vmatpush1.bf16.msra.mxu0 %v2378_v39 }
  0x47   :  { %574 = vmatmul.mubr.f32.gmra.mrb[2].mxu0 %v2359_v28 }
  0x48   :  { %579 = vmatprep.mubr.f32.mxu0 %v2274_v7 }
  0x4b   :  { %581 = vmatmul.mubr.f32.gmra.mrb[4].mxu0 %v2376_v38 }
  0x4c   :  { %586 = vmatprep.mubr.f32.mxu0 %v2274_v7 }
  0x4f   :  { %588 = vmatmul.mubr.f32.gmra.mrb[6].mxu0 %v2390_v50 }
  0x50   :  { %662 = vmatprep.mubr.f32.mxu0 %v2274_v7 }
  0x53   :  { %664 = vmatmul.mubr.f32.vlgmr.msra.gmra.mrb[0].mxu0 %v2349_v23 }
  0x54   :  { %669 = vmatprep.mubr.f32.mxu0 %v2274_v7 }
  0x57   :  { %671 = vmatmul.mubr.f32.gmra.mrb[2].mxu0 %v2359_v28 }
  0x58   :  { %676 = vmatprep.mubr.f32.mxu0 %v2274_v7 }
  0x5b   :  { %678 = vmatmul.mubr.f32.gmra.mrb[4].mxu0 %v2376_v38 }
  0x5c   :  { %683 = vmatprep.mubr.f32.mxu0 %v2274_v7 }
  0x5f   :  { %685 = vmatmul.mubr.f32.gmra.mrb[6].mxu0 %v2390_v50  ;;  %v2502_v50 = vsub.f32 %v735_v25, %v2485_v35 }
  0x60   :  { %1632 = vmatprep.mubr.f32.mxu0 %v2274_v7 }
  0xe2   :  { %v128_v63 = vpop.f32.mrb[0].mxu1 }
  0xe3   :  { %v130_v0 = vpop.f32.mrb[1].mxu1 }
  0xe6   :  { %v139_v1 = vpop.f32.mrb[2].mxu1 }
  0xe7   :  { %v141_v2 = vpop.f32.mrb[3].mxu1 }
  0xea   :  { %v150_v3 = vpop.f32.mrb[4].mxu1 }
  0xeb   :  { %v152_v4 = vpop.f32.mrb[5].mxu1 }
  0xee   :  { %v2443_v5 = vpop.f32.mrb[6].mxu1 }
  0xef   :  { %v2445_v6 = vpop.f32.mrb[7].mxu1 }
 0x126   :  { %v665_v19 = vpop.f32.mrb[0].mxu0 }
 0x127   :  { %v2144_v22 = vadd.f32 %v665_v19, %v128_v63  ;;  %v667_v23 = vpop.f32.mrb[1].mxu0 }
 0x128   :  { %v2145_v24 = vadd.f32 %v667_v23, %v130_v0 }
 0x129   :  { %v691_v26 = vmax.f32 %v2144_v22, 0.0 }
 0x12a   :  { %v692_v27 = vmax.f32 %v2145_v24, 0.0  ;;  %v672_v28 = vpop.f32.mrb[2].mxu0 }
 0x12b   :  { %v742_v32 = vand.u32 4294901760, %v691_v26  ;;  %v2146_v33 = vadd.f32 %v672_v28, %v139_v1  ;;  %v674_v34 = vpop.f32.mrb[3].mxu0 }
 0x12c   :  { %v740_v36 = vand.u32 4294901760, %v692_v27  ;;  %v2147_v37 = vadd.f32 %v674_v34, %v141_v2 }
 0x12d   :  { %v2487_v38 = vsub.f32 %v691_v26, %v742_v32  ;;  %v693_v39 = vmax.f32 %v2146_v33, 0.0  ;;  %v817_v33 = vand.u32 4294901760, %v2497_v44 }
 0x12e   :  { %v2492_v41 = vsub.f32 %v692_v27, %v740_v36  ;;  %v694_v42 = vmax.f32 %v2147_v37, 0.0  ;;  %v679_v43 = vpop.f32.mrb[4].mxu0 }
 0x12f   :  { %v865_v46 = vand.u32 4294901760, %v2487_v38  ;;  %v746_v47 = vand.u32 4294901760, %v693_v39  ;;  %v2148_v48 = vadd.f32 %v679_v43, %v150_v3  ;;  %v681_v49 = vpop.f32.mrb[5].mxu0  ;;  %v837_v43 = vand.u32 4294901760, %v2502_v50 }
 0x130   :  { %v859_v51 = vand.u32 4294901760, %v2492_v41  ;;  %v744_v52 = vand.u32 4294901760, %v694_v42  ;;  %v2149_v53 = vadd.f32 %v681_v49, %v152_v4 }
 0x131   :  { %v866_v55 = vsub.f32 %v2487_v38, %v865_v46  ;;  %v2509_v56 = vpack.c.bf16 %v746_v47, %v742_v32  ;;  %v2511_v57 = vsub.f32 %v693_v39, %v746_v47  ;;  %v695_v58 = vmax.f32 %v2148_v48, 0.0 }
 0x132   :  { %v2513_v59 = vsub.f32 %v694_v42, %v744_v52  ;;  %v696_v60 = vmax.f32 %v2149_v53, 0.0  ;;  %v686_v61 = vpop.f32.mrb[6].mxu0  ;;  %v2515_v62 = vpack.c.bf16 %v744_v52, %v740_v36  ;;  %v860_v63 = vsub.f32 %v2492_v41, %v859_v51 }
 0x133   :  { %v867_v0 = vand.u32 4294901760, %v866_v55  ;;  %v877_v1 = vand.u32 4294901760, %v2511_v57  ;;  %v750_v2 = vand.u32 4294901760, %v695_v58  ;;  %v2150_v3 = vadd.f32 %v686_v61, %v2443_v5  ;;  %v688_v4 = vpop.f32.mrb[7].mxu0 }
 0x134   :  { %v871_v8 = vand.u32 4294901760, %v2513_v59  ;;  %v748_v9 = vand.u32 4294901760, %v696_v60  ;;  %v2151_v10 = vadd.f32 %v688_v4, %v2445_v6  ;;  %2049 = vmatprep.subr.bf16.mxu1 %v2515_v62  ;;  %v861_v11 = vand.u32 4294901760, %v860_v63 }
 0x135   :  { %v878_v12 = vsub.f32 %v2511_v57, %v877_v1  ;;  %v2524_v13 = vsub.f32 %v695_v58, %v750_v2  ;;  %v697_v14 = vmax.f32 %v2150_v3, 0.0  ;;  %2051 = vmatpush1.bf16.msra.mxu1 %v2509_v56  ;;  %v2064_v15 = vpack.c.bf16 %v2513_v59, %v2492_v41 }
 0x136   :  { %v882_v5 = vsub.f32 %v696_v60, %v748_v9  ;;  %v698_v17 = vmax.f32 %v2151_v10, 0.0  ;;  %v872_v18 = vsub.f32 %v2513_v59, %v871_v8  ;;  %v2066_v6 = vpack.c.bf16 %v2511_v57, %v2487_v38 }
 0x137   :  { %v879_v19 = vand.u32 4294901760, %v878_v12  ;;  %v889_v22 = vand.u32 4294901760, %v2524_v13  ;;  %v754_v23 = vand.u32 4294901760, %v697_v14  ;;  %v2533_v24 = vpack.c.bf16 %v871_v8, %v859_v51 }
 0x138   :  { %v883_v25 = vand.u32 4294901760, %v882_v5  ;;  %v752_v26 = vand.u32 4294901760, %v698_v17  ;;  %v873_v27 = vand.u32 4294901760, %v872_v18  ;;  %v2535_v28 = vpack.c.bf16 %v877_v1, %v865_v46 }
 0x139   :  { %v2537_v31 = vpack.c.bf16 %v754_v23, %v750_v2  ;;  %v900_v32 = vsub.f32 %v697_v14, %v754_v23  ;;  %v2058_v34 = vpack.c.bf16 %v879_v19, %v867_v0  ;;  %v827_v39 = vsub.f32 %v2480_v30, %v826_v45 }
 0x13a   :  { %v894_v36 = vsub.f32 %v698_v17, %v752_v26  ;;  %v2540_v37 = vpack.c.bf16 %v752_v26, %v748_v9  ;;  %v2056_v38 = vpack.c.bf16 %v873_v27, %v861_v11  ;;  %v890_v41 = vsub.f32 %v2524_v13, %v889_v22 }
 0x13b   :  { %v901_v42 = vand.u32 4294901760, %v900_v32  ;;  %v2070_v46 = vpack.c.bf16 %v900_v32, %v2524_v13  ;;  %v884_v44 = vsub.f32 %v882_v5, %v883_v25  ;;  %v2551_v48 = vsub.f32 %v2490_v40, %v2506_v54  ;;  %v720_v13 = vpop.permute.xlu1 %719 }
 0x13c   :  { %v895_v47 = vand.u32 4294901760, %v894_v36  ;;  %2053 = vmatprep.subr.bf16.mxu1 %v2540_v37  ;;  %v2068_v49 = vpack.c.bf16 %v894_v36, %v882_v5  ;;  %v891_v57 = vand.u32 4294901760, %v890_v41  ;;  %v828_v59 = vand.u32 4294901760, %v827_v39 }
 0x13d   :  { %v902_v51 = vsub.f32 %v900_v32, %v901_v42  ;;  %2055 = vmatpush1.bf16.msra.mxu1 %v2537_v31  ;;  %v2086_v52 = vpack.c.bf16 %v901_v42, %v889_v22  ;;  %v885_v60 = vand.u32 4294901760, %v884_v44  ;;  %v838_v63 = vsub.f32 %v2502_v50, %v837_v43 }
 0x13e   :  { %2057 = vmatprep.subr.bf16.mxu1 %v2056_v38  ;;  %v896_v53 = vsub.f32 %v894_v36, %v895_v47  ;;  %v2084_v55 = vpack.c.bf16 %v895_v47, %v883_v25  ;;  %v848_v40 = vand.u32 4294901760, %v2551_v48 }
 0x13f   :  { %v903_v58 = vand.u32 4294901760, %v902_v51  ;;  %v839_v2 = vand.u32 4294901760, %v838_v63  ;;  %v725_v39 = vpop.permute.xlu1 %724 }
 0x140   :  { %818 = vmatmul.mubr.f32.vlgmr.msra.gmra.mrb[8].mxu1 %v817_v33  ;;  %v897_v61 = vand.u32 4294901760, %v896_v53  ;;  %v849_v3 = vsub.f32 %v2551_v48, %v848_v40 }
 0x141   :  { %2059 = vmatpush1.bf16.msra.mxu1 %v2058_v34  ;;  %823 = vmatprep.mubr.f32.mxu1 %v2274_v7  ;;  %v2062_v0 = vpack.c.bf16 %v903_v58, %v891_v57 }
 0x142   :  { %v2060_v1 = vpack.c.bf16 %v897_v61, %v885_v60  ;;  %v850_v4 = vand.u32 4294901760, %v849_v3 }
 0x144   :  { %829 = vmatmul.mubr.f32.gmra.mrb[10].mxu1 %v828_v59  ;;  %2061 = vmatprep.subr.bf16.mxu1 %v2060_v1 }
 0x145   :  { %2063 = vmatpush1.bf16.msra.mxu1 %v2062_v0  ;;  %834 = vmatprep.mubr.f32.mxu1 %v2274_v7 }
 0x146   :  { %2065 = vmatprep.subr.bf16.mxu1 %v2064_v15 }
 0x148   :  { %840 = vmatmul.mubr.f32.gmra.mrb[12].mxu1 %v839_v2 }
 0x149   :  { %845 = vmatprep.mubr.f32.mxu1 %v2274_v7 }
 0x14c   :  { %851 = vmatmul.mubr.f32.gmra.mrb[14].mxu1 %v850_v4 }
 0x14d   :  { %961 = vmatprep.mubr.f32.mxu1 %v2274_v7 }
 0x150   :  { %963 = vmatmul.mubr.f32.vlgmr.msra.gmra.mrb[8].mxu1 %v2466_v16 }
 0x151   :  { %2067 = vmatpush1.bf16.msra.mxu1 %v2066_v6  ;;  %968 = vmatprep.mubr.f32.mxu1 %v2274_v7 }
 0x152   :  { %2069 = vmatprep.subr.bf16.mxu1 %v2068_v49 }
 0x154   :  { %970 = vmatmul.mubr.f32.gmra.mrb[10].mxu1 %v2475_v21 }
 0x155   :  { %2071 = vmatpush1.bf16.msra.mxu1 %v2070_v46  ;;  %975 = vmatprep.mubr.f32.mxu1 %v2274_v7 }
 0x156   :  { %2073 = vmatprep.subr.bf16.mxu1 %v2515_v62 }
 0x158   :  { %977 = vmatmul.mubr.f32.gmra.mrb[12].mxu1 %v2485_v35 }
 0x159   :  { %982 = vmatprep.mubr.f32.mxu1 %v2274_v7 }
 0x15c   :  { %984 = vmatmul.mubr.f32.gmra.mrb[14].mxu1 %v2506_v54 }
 0x15d   :  { %1070 = vmatprep.mubr.f32.mxu1 %v2274_v7 }
 0x160   :  { %1073 = vmatmul.mubr.f32.vlgmr.msra.gmra.mrb[8].mxu1 %v2473_v20  ;;  %v710_v20 = vpop.permute.xlu0 %709 }
 0x161   :  { %2075 = vmatpush1.bf16.msra.mxu1 %v2509_v56  ;;  %1078 = vmatprep.mubr.f32.mxu1 %v2274_v7 }
 0x162   :  { %2077 = vmatprep.subr.bf16.mxu1 %v2540_v37 }
 0x164   :  { %1081 = vmatmul.mubr.f32.gmra.mrb[10].mxu1 %v2480_v30 }
 0x165   :  { %2079 = vmatpush1.bf16.msra.mxu1 %v2537_v31  ;;  %1086 = vmatprep.mubr.f32.mxu1 %v2274_v7 }
 0x166   :  { %2081 = vmatprep.subr.bf16.mxu1 %v2533_v24 }
 0x168   :  { %1089 = vmatmul.mubr.f32.gmra.mrb[12].mxu1 %v2502_v50  ;;  %v715_v50 = vpop.permute.xlu0 %714 }
 0x169   :  { %1094 = vmatprep.mubr.f32.mxu1 %v2274_v7 }
 0x16c   :  { %1097 = vmatmul.mubr.f32.gmra.mrb[14].mxu1 %v2551_v48 }
 0x16d   :  { %1175 = vmatprep.mubr.f32.mxu1 %v2274_v7 }
 0x170   :  { %1179 = vmatmul.mubr.f32.vlgmr.msra.gmra.mrb[8].mxu1 %v815_v29  ;;  %v1438_v29 = vld [vmem:[%s2691_s5] sm:$0x1] }
 0x171   :  { %2083 = vmatpush1.bf16.msra.mxu1 %v2535_v28  ;;  %1184 = vmatprep.mubr.f32.mxu1 %v2274_v7 }
 0x172   :  { %2085 = vmatprep.subr.bf16.mxu1 %v2084_v55 }
 0x174   :  { %1188 = vmatmul.mubr.f32.gmra.mrb[10].mxu1 %v826_v45 }
 0x175   :  { %2087 = vmatpush1.bf16.msra.mxu1 %v2086_v52  ;;  %1193 = vmatprep.mubr.f32.mxu1 %v2274_v7 }
 0x176   :  { %2089 = vmatprep.subr.bf16.mxu1 %v2515_v62 }
 0x178   :  { %1197 = vmatmul.mubr.f32.gmra.mrb[12].mxu1 %v837_v43 }
 0x179   :  { %1202 = vmatprep.mubr.f32.mxu1 %v2274_v7 }
 0x17c   :  { %1206 = vmatmul.mubr.f32.gmra.mrb[14].mxu1 %v848_v40 }
 0x17d   :  { %1300 = vmatprep.mubr.f32.mxu1 %v2274_v7 }
 0x180   :  { %1302 = vmatmul.mubr.f32.vlgmr.msra.gmra.mrb[8].mxu1 %v2466_v16 }
 0x181   :  { %2091 = vmatpush1.bf16.msra.mxu1 %v2509_v56  ;;  %1307 = vmatprep.mubr.f32.mxu1 %v2274_v7 }
 0x182   :  { %2093 = vmatprep.subr.bf16.mxu1 %v2540_v37 }
 0x184   :  { %1309 = vmatmul.mubr.f32.gmra.mrb[10].mxu1 %v2475_v21 }
 0x185   :  { %2095 = vmatpush1.bf16.msra.mxu1 %v2537_v31  ;;  %1314 = vmatprep.mubr.f32.mxu1 %v2274_v7 }
 0x188   :  { %1316 = vmatmul.mubr.f32.gmra.mrb[12].mxu1 %v2485_v35 }
 0x189   :  { %1321 = vmatprep.mubr.f32.mxu1 %v2274_v7 }
 0x18c   :  { %1323 = vmatmul.mubr.f32.gmra.mrb[14].mxu1 %v2506_v54 }
 0x18d   :  { %1401 = vmatprep.mubr.f32.mxu1 %v2274_v7 }
 0x190   :  { %1403 = vmatmul.mubr.f32.vlgmr.msra.gmra.mrb[8].mxu1 %v2466_v16 }
 0x191   :  { %1408 = vmatprep.mubr.f32.mxu1 %v2274_v7 }
 0x194   :  { %1410 = vmatmul.mubr.f32.gmra.mrb[10].mxu1 %v2475_v21  ;;  %v1442_v21 = vsel %vm727_vm2, %v1438_v29, 0 }
 0x195   :  { %1415 = vmatprep.mubr.f32.mxu1 %v2274_v7  ;;  %v2619_v9 = vand.u32 4294901760, %v1442_v21 }
 0x197   :  { %v2622_v15 = vsub.f32 %v1442_v21, %v2619_v9 }
 0x198   :  { %1417 = vmatmul.mubr.f32.gmra.mrb[12].mxu1 %v2485_v35 }
 0x199   :  { %1422 = vmatprep.mubr.f32.mxu1 %v2274_v7  ;;  %v1519_v22 = vand.u32 4294901760, %v2622_v15 }
 0x19b   :  { %v2634_v32 = vsub.f32 %v2622_v15, %v1519_v22 }
 0x19c   :  { %1424 = vmatmul.mubr.f32.gmra.mrb[14].mxu1 %v2506_v54 }
 0x19d   :  { %1516 = vmatprep.mubr.f32.mxu1 %v2274_v7 }
 0x263   :  { %v1404_v16 = vpop.f32.mrb[8].mxu1 }
 0x264   :  { %v2152_v30 = vadd.f32 %v1404_v16, %v710_v20  ;;  %v1406_v45 = vpop.f32.mrb[9].mxu1 }
 0x265   :  { %v2153_v56 = vadd.f32 %v1406_v45, %v710_v20 }
 0x266   :  { %v1430_v62 = vmax.f32 %v2152_v30, 0.0 }
 0x267   :  { %v1431_v35 = vmax.f32 %v2153_v56, 0.0  ;;  %v1411_v8 = vpop.f32.mrb[10].mxu1 }
 0x268   :  { %v1446_v54 = vand.u32 4294901760, %v1430_v62  ;;  %v2154_v10 = vadd.f32 %v1411_v8, %v715_v50  ;;  %v1413_v11 = vpop.f32.mrb[11].mxu1 }
 0x269   :  { %v1444_v12 = vand.u32 4294901760, %v1431_v35  ;;  %v2155_v14 = vadd.f32 %v1413_v11, %v715_v50 }
 0x26a   :  { %v2624_v5 = vsub.f32 %v1430_v62, %v1446_v54  ;;  %v1432_v17 = vmax.f32 %v2154_v10, 0.0 }
 0x26b   :  { %v2626_v18 = vsub.f32 %v1431_v35, %v1444_v12  ;;  %v1433_v6 = vmax.f32 %v2155_v14, 0.0  ;;  %v1418_v19 = vpop.f32.mrb[12].mxu1 }
 0x26c   :  { %v1536_v23 = vand.u32 4294901760, %v2624_v5  ;;  %v1450_v24 = vand.u32 4294901760, %v1432_v17  ;;  %v2156_v25 = vadd.f32 %v1418_v19, %v720_v13  ;;  %v1420_v26 = vpop.f32.mrb[13].mxu1 }
 0x26d   :  { %v1530_v27 = vand.u32 4294901760, %v2626_v18  ;;  %v1448_v28 = vand.u32 4294901760, %v1433_v6  ;;  %v2157_v31 = vadd.f32 %v1420_v26, %v720_v13 }
 0x26e   :  { %v1537_v33 = vsub.f32 %v2624_v5, %v1536_v23  ;;  %v2637_v34 = vpack.c.bf16 %v1450_v24, %v1446_v54  ;;  %v2639_v36 = vsub.f32 %v1432_v17, %v1450_v24  ;;  %v1434_v37 = vmax.f32 %v2156_v25, 0.0 }
 0x26f   :  { %v2641_v38 = vsub.f32 %v1433_v6, %v1448_v28  ;;  %v1435_v41 = vmax.f32 %v2157_v31, 0.0  ;;  %v1425_v42 = vpop.f32.mrb[14].mxu1  ;;  %v2643_v43 = vpack.c.bf16 %v1448_v28, %v1444_v12  ;;  %v1531_v46 = vsub.f32 %v2626_v18, %v1530_v27 }
 0x270   :  { %v1538_v47 = vand.u32 4294901760, %v1537_v33  ;;  %v1548_v44 = vand.u32 4294901760, %v2639_v36  ;;  %v1454_v48 = vand.u32 4294901760, %v1434_v37  ;;  %v2158_v49 = vadd.f32 %v1425_v42, %v725_v39  ;;  %v1427_v51 = vpop.f32.mrb[15].mxu1 }
 0x271   :  { %v1542_v52 = vand.u32 4294901760, %v2641_v38  ;;  %v1452_v53 = vand.u32 4294901760, %v1435_v41  ;;  %v2159_v55 = vadd.f32 %v1427_v51, %v725_v39  ;;  %2097 = vmatprep.subr.bf16.mxu1 %v2643_v43  ;;  %v1532_v57 = vand.u32 4294901760, %v1531_v46 }
 0x272   :  { %v1549_v58 = vsub.f32 %v2639_v36, %v1548_v44  ;;  %v1559_v59 = vsub.f32 %v1434_v37, %v1454_v48  ;;  %v1436_v60 = vmax.f32 %v2158_v49, 0.0  ;;  %2099 = vmatpush1.bf16.msra.mxu1 %v2637_v34  ;;  %v2112_v61 = vpack.c.bf16 %v2641_v38, %v2626_v18 }
 0x273   :  { %v1553_v63 = vsub.f32 %v1435_v41, %v1452_v53  ;;  %v1437_v40 = vmax.f32 %v2159_v55, 0.0  ;;  %v1543_v0 = vsub.f32 %v2641_v38, %v1542_v52  ;;  %v2114_v1 = vpack.c.bf16 %v2639_v36, %v2624_v5 }
 0x274   :  { %v1550_v2 = vand.u32 4294901760, %v1549_v58  ;;  %v1560_v3 = vand.u32 4294901760, %v1559_v59  ;;  %v1458_v4 = vand.u32 4294901760, %v1436_v60  ;;  %v2128_v20 = vpack.c.bf16 %v1542_v52, %v1530_v27 }
 0x275   :  { %v1554_v29 = vand.u32 4294901760, %v1553_v63  ;;  %v1456_v16 = vand.u32 4294901760, %v1437_v40  ;;  %v1544_v30 = vand.u32 4294901760, %v1543_v0  ;;  %v2130_v45 = vpack.c.bf16 %v1548_v44, %v1536_v23 }
 0x276   :  { %v2102_v21 = vpack.c.bf16 %v1458_v4, %v1454_v48  ;;  %v1571_v50 = vsub.f32 %v1436_v60, %v1458_v4  ;;  %v2106_v56 = vpack.c.bf16 %v1550_v2, %v1538_v47  ;;  %v1561_v54 = vsub.f32 %v1559_v59, %v1560_v3 }
 0x277   :  { %v1565_v62 = vsub.f32 %v1437_v40, %v1456_v16  ;;  %v2100_v35 = vpack.c.bf16 %v1456_v16, %v1452_v53  ;;  %v2104_v8 = vpack.c.bf16 %v1544_v30, %v1532_v57  ;;  %v1555_v13 = vsub.f32 %v1553_v63, %v1554_v29 }
 0x278   :  { %v1572_v10 = vand.u32 4294901760, %v1571_v50  ;;  %v2118_v11 = vpack.c.bf16 %v1571_v50, %v1559_v59  ;;  %v1521_v5 = vand.u32 4294901760, %v2634_v32  ;;  %v1562_v23 = vand.u32 4294901760, %v1561_v54 }
 0x279   :  { %v1566_v12 = vand.u32 4294901760, %v1565_v62  ;;  %2101 = vmatprep.subr.bf16.mxu1 %v2100_v35  ;;  %2105 = vmatprep.subr.bf16.mxu0 %v2104_v8  ;;  %v2116_v14 = vpack.c.bf16 %v1565_v62, %v1553_v63  ;;  %v1556_v25 = vand.u32 4294901760, %v1555_v13  ;;  %v2276_v32 = vmov 1966171168  }
 0x27a   :  { %v1573_v17 = vsub.f32 %v1571_v50, %v1572_v10  ;;  %2103 = vmatpush1.bf16.msra.mxu1 %v2102_v21  ;;  %2107 = vmatpush1.bf16.msra.mxu0 %v2106_v56  ;;  %v2134_v18 = vpack.c.bf16 %v1572_v10, %v1560_v3  ;;  %v1991_v33 = vunpack.c.l.s4 %v2276_v32  ;;  %v1993_v36 = vlaneseq }
 0x27b   :  { %v1567_v6 = vsub.f32 %v1565_v62, %v1566_v12  ;;  %v2132_v19 = vpack.c.bf16 %v1566_v12, %v1554_v29 }
 0x27c   :  { %v1574_v24 = vand.u32 4294901760, %v1573_v17  ;;  %v1992_v39 = vunpack.c.0.s8 %v1991_v33  ;;  %v1994_v41 = vshrl.u32 %v1993_v36, 7  ;;  %vm2007_vm3 = vcmp.lt.s32.totalorder %v1993_v36, 256 }
 0x27d   :  { %v1568_v26 = vand.u32 4294901760, %v1567_v6  ;;  %1522 = vmatmul.mubr.f32.vlgmr.msra.gmra.mrb[16].mxu1 %v1521_v5 }
 0x27e   :  { %v2110_v27 = vpack.c.bf16 %v1574_v24, %v1562_v23  ;;  %v1995_v46 = vsub.s32 %v1992_v39, %v1994_v41 }
 0x27f   :  { %v2108_v28 = vpack.c.bf16 %v1568_v26, %v1556_v25 }
 0x281   :  { %2109 = vmatprep.subr.bf16.mxu0 %v2108_v28 }
 0x282   :  { %2111 = vmatpush1.bf16.msra.mxu0 %v2110_v27 }
 0x283   :  { %2113 = vmatprep.subr.bf16.mxu0 %v2112_v61 }
 0x285   :  { %1634 = vmatmul.mubr.f32.vlgmr.msra.gmra.mrb[8].mxu0 %v2619_v9 }
 0x286   :  { %2115 = vmatpush1.bf16.msra.mxu0 %v2114_v1  ;;  %1720 = vmatprep.mubr.f32.mxu0 %v2274_v7 }
 0x287   :  { %2117 = vmatprep.subr.bf16.mxu0 %v2116_v14 }
 0x28a   :  { %2119 = vmatpush1.bf16.msra.mxu0 %v2118_v11 }
 0x28b   :  { %2121 = vmatprep.subr.bf16.mxu0 %v2643_v43 }
 0x28d   :  { %1723 = vmatmul.mubr.f32.vlgmr.msra.gmra.mrb[8].mxu0 %v2622_v15 }
 0x28e   :  { %2123 = vmatpush1.bf16.msra.mxu0 %v2637_v34  ;;  %1801 = vmatprep.mubr.f32.mxu0 %v2274_v7 }
 0x28f   :  { %2125 = vmatprep.subr.bf16.mxu0 %v2100_v35 }
 0x292   :  { %2127 = vmatpush1.bf16.msra.mxu0 %v2102_v21 }
 0x293   :  { %2129 = vmatprep.subr.bf16.mxu0 %v2128_v20 }
 0x295   :  { %1805 = vmatmul.mubr.f32.vlgmr.msra.gmra.mrb[8].mxu0 %v1519_v22  ;;  %v1440_v22 = vstv %s2686_s0  ;;  %s2250_s0 = scalar_lea.vmem %s2017_s29, 32 }
 0x296   :  { %2131 = vmatpush1.bf16.msra.mxu0 %v2130_v45  ;;  %1899 = vmatprep.mubr.f32.mxu0 %v2274_v7  ;;  %p2251_p0 = scmp.ne.s32.totalorder %s2017_s29, %s2250_s0  ;;  %p2256_p2 = scmp.lt.s32.totalorder %s2250_s0, %s2250_s0 }
 0x297   :  { %2133 = vmatprep.subr.bf16.mxu0 %v2132_v19 }
 0x298   :  { %p2257_p3 = por %p2256_p2, %p2255_p1 }
 0x29a   :  { %2135 = vmatpush1.bf16.msra.mxu0 %v2134_v18  ;;  %p2258_p4 = pnand %p2257_p3, %p2251_p0 }
 0x29b   :  { %2137 = vmatprep.subr.bf16.mxu0 %v2643_v43 }
 0x29d   :  { %1901 = vmatmul.mubr.f32.vlgmr.msra.gmra.mrb[8].mxu0 %v2619_v9 }
 0x29e   :  { %2139 = vmatpush1.bf16.msra.mxu0 %v2637_v34  ;;  %1979 = vmatprep.mubr.f32.mxu0 %v2274_v7 }
 0x29f   :  { %2141 = vmatprep.subr.bf16.mxu0 %v2100_v35 }
 0x2a2   :  { %2143 = vmatpush1.bf16.msra.mxu0 %v2102_v21 }
 0x2a5   :  { %1981 = vmatmul.mubr.f32.vlgmr.msra.gmra.mrb[8].mxu0 %v2619_v9 }
 0x350   :  { %v1523_v31 = vpop.f32.mrb[16].mxu1 }
 0x351   :  { %v1525_v15 = vpop.f32.mrb[17].mxu1  ;;  %v1524_v37 = vadd.f32 %v1523_v31, %v1440_v22 }
 0x352   :  { %v1526_v38 = vadd.f32 %v1525_v15, %v1440_v22 }
 0x378   :  { %v1982_v34 = vpop.f32.mrb[8].mxu0 }
 0x379   :  { %v2161_v42 = vadd.f32 %v1982_v34, %v1524_v37  ;;  %v1984_v7 = vpop.f32.mrb[9].mxu0 }
 0x37a   :  { %v2163_v43 = vadd.f32 %v1984_v7, %v1526_v38 }
 0x37c   :  { %v1989_v47 = vcombine.low %v2161_v42, %v2163_v43 }
 0x37e   :  { %v1996_v9 = vrot.slane %v1989_v47, %v1995_v46 }
 0x380   :  { %v2003_v44 = vrot.slane %v1996_v9, %v1995_v46 }
 0x382   :  { %2009 = vst.msk [vmem:[#allocation3] sm:$0x3] %vm2007_vm3, %v2003_v44 }
 0x383   :  { %2261 = shalt.err (!%p2258_p4)
}
 0x384   :  { %s2262_s8 = scalar_lea.hbm %s2692_s6, 32 }
 0x385   :  { %p2263_p5 = scmp.ne.s32.totalorder %s2692_s6, %s2262_s8  ;;  %p2266_p6 = scmp.lt.u32.totalorder %s2262_s8, %s2692_s6 }
 0x387   :  { %p2268_p7 = pnand %p2266_p6, %p2263_p5 }
 0x389   :  { %2271 = shalt.err (!%p2268_p7)
}
 0x38a   :  { %2019 = dma.vmem_to_hbm [thread:$0]  %s2017_s29, 32, %s2692_s6, [#allocation4]  }
 0x38b   :  { %2272 = dma.done.wait [#allocation4], 32  }
 0x38c   :  { %2273 = vsyncadd [#allocation4], 4294967264 }
 0x38d   :  { %2023 = vsyncpa [#allocation4], 1 }

</bundles_post_ra>
